<compile_context>
chip_gen: v6e
topology: v6e:2x2x1
jax: 0.10.0
libtpu: 0.0.40
codegen_flags: <defaults>
</compile_context>

<pallas_src>
import jax
import jax.numpy as jnp
from jax.experimental import pallas as pl
from jax.experimental.pallas import tpu as pltpu


def _copy_kernel(x_ref, o_ref):
    # Whole-tile VMEM copy.
    o_ref[...] = x_ref[...]


_LANE_CANDIDATES = (1024, 512, 256, 128)
# Budget for the 4 resident tiles (input + output, each double-buffered).
# 8 MiB total => comfortably below every generation's scoped-VMEM default.
_VMEM_TILE_BUDGET = 8 * 1024 * 1024


def _pick_lane(numel: int):
    for lane in _LANE_CANDIDATES:
        if numel % lane == 0:
            return lane
    return None


def _pick_tile_rows(rows: int, lane: int, itemsize: int) -> int:
    max_rows = _VMEM_TILE_BUDGET // (4 * lane * itemsize)
    max_rows = max(8, (max_rows // 8) * 8)
    if rows <= max_rows:
        # Single full-extent block along rows (exempt from the /8 rule).
        return rows
    # Multiple of 8; grid uses cdiv so a ragged tail tile is handled by Pallas.
    return max_rows


def identity(x: jax.Array) -> jax.Array:
    """Pallas identity: y = x, same shape and dtype."""
    if x.size == 0:
        return x

    numel = x.size
    itemsize = jnp.dtype(x.dtype).itemsize
    lane = _pick_lane(numel)
    if lane is None:
        # Cheapest possible identity — no kernel launch, no HBM traffic.
        # TODO(synk): pad-to-128 kernel path for unaligned sizes if a launch is ever required.
        return x

    orig_shape = x.shape
    rows = numel // lane
    x2 = x.reshape(rows, lane)

    tm = _pick_tile_rows(rows, lane, itemsize)
    grid = (pl.cdiv(rows, tm),)

    out = pl.pallas_call(
        _copy_kernel,
        out_shape=jax.ShapeDtypeStruct((rows, lane), x2.dtype),
        grid=grid,
        in_specs=[pl.BlockSpec((tm, lane), lambda i: (i, 0))],
        out_specs=pl.BlockSpec((tm, lane), lambda i: (i, 0)),
        # Output aliases the input buffer: identity needs no new HBM output.
        input_output_aliases={0: 0},
        compiler_params=pltpu.CompilerParams(
            # "parallel" lets v7x shard row tiles across its 2 TensorCores;
            # neutral on v5e/v6e.
            dimension_semantics=("parallel",),
        ),
        cost_estimate=pl.CostEstimate(
            flops=0,
            transcendentals=0,
            bytes_accessed=2 * numel * itemsize,
        ),
    )(x2)
    return out.reshape(orig_shape)


if __name__ == "__main__":
    key = jax.random.PRNGKey(0)

    # Primary check: NCHW-style input, numel = 2048 (multiple of 128) -> kernel path.
    x = jax.random.normal(key, (2, 4, 16, 16), dtype=jnp.float32)
    y = identity(x)
    jax.block_until_ready(y)
    assert y.shape == x.shape
    assert y.dtype == x.dtype
    assert bool(jnp.all(y == x))

    # Secondary check: unaligned numel exercises the zero-cost fallback path.
    x_odd = jax.random.normal(jax.random.PRNGKey(1), (3, 5, 7), dtype=jnp.bfloat16)
    y_odd = identity(x_odd)
    jax.block_until_ready(y_odd)
    assert y_odd.shape == x_odd.shape
    assert y_odd.dtype == x_odd.dtype
    assert bool(jnp.all(y_odd == x_odd))

    print("KERNEL_OK")
</pallas_src>

<mosaic_0001>
module attributes {stable_mosaic.version = 11 : i64} {
  func.func @_copy_kernel(%arg0: i32, %arg1: memref<2x1024xf32, #tpu.memory_space<vmem>>, %arg2: memref<2x1024xf32, #tpu.memory_space<vmem>>) attributes {dimension_semantics = [#tpu.dimension_semantics<parallel>], iteration_bounds = array<i64: 1>, scalar_prefetch = 0 : i64, scratch_operands = 0 : i64, tpu.core_type = #tpu.core_type<tc>, window_params = [{transform_indices = @transform_0, window_bounds = array<i64: 2, 1024>}, {transform_indices = @transform_1, window_bounds = array<i64: 2, 1024>}]} {
    %c0 = arith.constant 0 : index
    %c0_0 = arith.constant 0 : index
    %0 = vector.load %arg1[%c0, %c0_0] : memref<2x1024xf32, #tpu.memory_space<vmem>>, vector<2x1024xf32>
    %c0_1 = arith.constant 0 : index
    %c0_2 = arith.constant 0 : index
    %1 = vector.load %arg2[%c0_1, %c0_2] : memref<2x1024xf32, #tpu.memory_space<vmem>>, vector<2x1024xf32>
    tpu.vector_store %arg2[%c0_1, %c0_2], %0 {strides = array<i32>} : memref<2x1024xf32, #tpu.memory_space<vmem>>, vector<2x1024xf32>,
    return
  }
  func.func @transform_0(%arg0: i32) -> (i32, i32) {
    %c0_i32 = arith.constant 0 : i32
    %c0_i32_0 = arith.constant 0 : i32
    return %arg0, %c0_i32 : i32, i32
  }
  func.func @transform_1(%arg0: i32) -> (i32, i32) {
    %c0_i32 = arith.constant 0 : i32
    %c0_i32_0 = arith.constant 0 : i32
    return %arg0, %c0_i32 : i32, i32
  }
}

</mosaic_0001>

<bundles_post_ra>
// kernel: tpu_custom_call.1
= control target key start
LH: loop header
LB: loop body
LE: loop exit
PB: predicated region body
PF: predicated region fallthrough
CT: control target
= control target key end

     0   :  { %6 = vsyncpa [#allocation3], 0  ;;  %s104_s0 = inlined_call_operand.hbm [shape: f32[2,1024], index: 0, kind: input, shape index: {}, may-alias: {0,1}]   ;;  %s105_s1 = inlined_call_operand.hbm [shape: f32[2,1024], index: 1, kind: output, shape index: {}, may-alias: {0,1}]  }
   0x1   :  { %7 = vsyncpa [#allocation4], 0  ;;  %s86_s6 = smov [#allocation2]  }
   0x2   :  { %s14_s7 = sshll.u32 %s86_s6, 4  ;;  %s15_s7 = int_to_ptr.vmem [resolvable:$true] %s14_s7 }
   0x3   :  { %s50_s8 = scalar_lea.vmem %s15_s7, 256  ;;  %p55_p1 = scmp.lt.s32.totalorder %s15_s7, %s15_s7 }
   0x4   :  { %p51_p0 = scmp.ne.s32.totalorder %s15_s7, %s50_s8  ;;  %p56_p2 = scmp.lt.s32.totalorder %s50_s8, %s50_s8 }
   0x6   :  { %p57_p3 = por %p56_p2, %p55_p1 }
   0x8   :  { %p58_p4 = pnand %p57_p3, %p51_p0 }
   0xa   :  { %61 = shalt.err (!%p58_p4)
}
   0xb   :  { %17 = dma.hbm_to_vmem [thread:$0]  %s104_s0, 256, %s15_s7, [#allocation3]  }
   0xc   :  { %82 = dma.done.wait [#allocation3], 256  }
   0xd   :  { %83 = vsyncadd [#allocation3], 4294967040  ;;  %s87_s11 = smov [#allocation5]   ;;  %v21_v0 = vld [vmem:[#allocation2] sm:$0xff]  ;;  %v22_v1 = vld [vmem:[#allocation2 + $0x8] sm:$0xff] }
   0xe   :  { %s31_s12 = sshll.u32 %s87_s11, 4  ;;  %23 = vst [vmem:[#allocation5] sm:$0xff] %v21_v0  ;;  %24 = vst [vmem:[#allocation5 + $0x8] sm:$0xff] %v22_v1  ;;  %s32_s12 = int_to_ptr.vmem [resolvable:$true] %s31_s12 }
   0xf   :  { %s62_s13 = scalar_lea.vmem %s32_s12, 256  ;;  %p67_p6 = scmp.lt.s32.totalorder %s32_s12, %s32_s12 }
  0x10   :  { %p63_p5 = scmp.ne.s32.totalorder %s32_s12, %s62_s13  ;;  %p68_p7 = scmp.lt.s32.totalorder %s62_s13, %s62_s13 }
  0x12   :  { %p69_p8 = por %p68_p7, %p67_p6 }
  0x14   :  { %p70_p9 = pnand %p69_p8, %p63_p5 }
  0x16   :  { %73 = shalt.err (!%p70_p9)
}
  0x17   :  { %34 = dma.vmem_to_hbm [thread:$0]  %s32_s12, 256, %s105_s1, [#allocation4]  }
  0x18   :  { %84 = dma.done.wait [#allocation4], 256  }
  0x19   :  { %85 = vsyncadd [#allocation4], 4294967040 }
  0x1a   :  { %38 = vsyncpa [#allocation3], 1 }
  0x1b   :  { %39 = vsyncpa [#allocation4], 1 }

</bundles_post_ra>
